<compile_context>
chip_gen: v7x
topology: tpu7x:2x2x1
jax: 0.10.0
libtpu: 0.0.40
codegen_flags: <defaults>
</compile_context>

<pallas_src>
import jax
import jax.numpy as jnp
from jax.experimental import pallas as pl
from jax.experimental.pallas import tpu as pltpu


N_STATES = 6          # 3 trust levels x 2 risk levels
N_STATES_PAD = 8      # padded to a full sublane group


def _round_up(x, m):
    return ((x + m - 1) // m) * m


def policy_kernel(obs_ref, logits6_ref, out_ref):
    """One grid step handles a TB-wide, lane-dense slab of the batch.

    obs_ref    : (2, TB) int32  row 0 = trust index, row 1 = risk index
    logits6_ref: (A, 8)  f32    folded fc logits, one column per (trust, risk)
                                state; columns 6, 7 are zero padding
    out_ref    : (A, TB) f32    softmax probabilities, batch on the lane axis
    """
    obs = obs_ref[...]
    idx = obs[0:1, :] * 2 + obs[1:2, :]                       # (1, TB) int32
    tb = idx.shape[1]

    # One-hot over the (padded) state axis; a single tiny MXU push gathers the
    # per-sample logits column from the folded table.
    iota_s = jax.lax.broadcasted_iota(jnp.int32, (N_STATES_PAD, tb), 0)
    onehot = (iota_s == idx).astype(jnp.float32)              # (8, TB)
    logits = jnp.dot(logits6_ref[...], onehot,
                     preferred_element_type=jnp.float32)      # (A, TB)

    # Softmax over the action axis (sublanes): the A-row reduction rides the
    # XLU, the reciprocal rides the EUP (approx=True: no VPU refinement pass).
    m = jnp.max(logits, axis=0, keepdims=True)                # (1, TB)
    e = jnp.exp(logits - m)
    s = jnp.sum(e, axis=0, keepdims=True)
    out_ref[...] = e * pl.reciprocal(s, approx=True)


def policy_net_forward(obs, params, *, block_b=4096, feature_major_out=False):
    """obs: (B, 2) int32 (trust in [0,3), risk in [0,2)).

    Returns (B, n_actions) f32 by default (PyTorch layout), or (n_actions, B)
    when feature_major_out=True (skips the extra full-output transpose pass).
    """
    emb_t, emb_r, w1, b1, w2, b2 = params
    n_actions = w2.shape[1]
    B = obs.shape[0]
    assert block_b % 128 == 0, "block_b must be a multiple of 128 lanes"

    # ---- exact parameter folding (plain JAX, once per call) ----------------
    # Enumerate all 6 (trust, risk) states and push them through the whole MLP
    # body (embed -> concat -> fc1 -> ReLU -> fc2 + b2).  Each sample then only
    # needs to select its column and softmax it inside the kernel.
    t_idx = jnp.repeat(jnp.arange(3, dtype=jnp.int32), 2)        # [0,0,1,1,2,2]
    r_idx = jnp.tile(jnp.arange(2, dtype=jnp.int32), 3)          # [0,1,0,1,0,1]
    x6 = jnp.concatenate([emb_t[t_idx], emb_r[r_idx]], axis=-1)  # (6, 6)
    h6 = jnp.maximum(x6 @ w1 + b1, 0.0)                          # (6, hidden)
    logits6 = (h6 @ w2 + b2).T                                   # (A, 6)
    logits6 = jnp.pad(logits6,
                      ((0, 0), (0, N_STATES_PAD - N_STATES)))    # (A, 8)

    # ---- batch tiling: always 128-lane aligned, lane-dense ------------------
    tb = min(block_b, _round_up(B, 128))
    bp = _round_up(B, tb)

    # Pad + transpose obs once (state 0 padding); index math happens in-kernel.
    obs_t = jnp.pad(obs.astype(jnp.int32), ((0, bp - B), (0, 0))).T   # (2, bp)

    out = pl.pallas_call(
        policy_kernel,
        out_shape=jax.ShapeDtypeStruct((n_actions, bp), jnp.float32),
        grid=(bp // tb,),
        in_specs=[
            pl.BlockSpec((2, tb), lambda i: (0, i)),
            pl.BlockSpec((n_actions, N_STATES_PAD), lambda i: (0, 0)),
        ],
        out_specs=pl.BlockSpec((n_actions, tb), lambda i: (0, i)),
        compiler_params=pltpu.CompilerParams(
            dimension_semantics=("parallel",)),
    )(obs_t, logits6)

    out = out[:, :B]                                              # (A, B)
    return out if feature_major_out else out.T                    # (B, A)


def init_params(key, n_actions=4):
    """Deterministic synthetic init matching the PyTorch module's shapes."""
    ks = jax.random.split(key, 6)
    emb_t = jax.random.normal(ks[0], (3, 4), jnp.float32)          # Embedding(3, 4)
    emb_r = jax.random.normal(ks[1], (2, 2), jnp.float32)          # Embedding(2, 2)
    # Linear(6, 16): PyTorch weight is (16, 6); we store its transpose (6, 16).
    lim1 = 1.0 / jnp.sqrt(6.0)
    w1 = jax.random.uniform(ks[2], (6, 16), jnp.float32, -lim1, lim1)
    b1 = jax.random.uniform(ks[3], (1, 16), jnp.float32, -lim1, lim1)
    # Linear(16, n_actions): stored as (16, n_actions).
    lim2 = 1.0 / jnp.sqrt(16.0)
    w2 = jax.random.uniform(ks[4], (16, n_actions), jnp.float32, -lim2, lim2)
    b2 = jax.random.uniform(ks[5], (1, n_actions), jnp.float32, -lim2, lim2)
    return emb_t, emb_r, w1, b1, w2, b2


def reference_forward(obs, params):
    """Pure-JAX reference mirroring the PyTorch forward."""
    emb_t, emb_r, w1, b1, w2, b2 = params
    x = jnp.concatenate([emb_t[obs[:, 0]], emb_r[obs[:, 1]]], axis=-1)
    h = jnp.maximum(x @ w1 + b1, 0.0)
    logits = h @ w2 + b2
    return jax.nn.softmax(logits, axis=-1)


def make_obs(key, B):
    trust = jax.random.randint(key, (B, 1), 0, 3, jnp.int32)
    risk = jax.random.randint(jax.random.fold_in(key, 1), (B, 1), 0, 2, jnp.int32)
    return jnp.concatenate([trust, risk], axis=-1)               # (B, 2) int32


if __name__ == "__main__":
    key = jax.random.PRNGKey(0)
    k_obs, k_par = jax.random.split(key)

    n_actions = 4
    params = init_params(k_par, n_actions=n_actions)

    # Small batch: single 128-lane-aligned block.
    B = 8
    obs = make_obs(k_obs, B)
    out = jax.block_until_ready(policy_net_forward(obs, params))
    ref = reference_forward(obs, params)
    assert out.shape == (B, n_actions)
    # approx=True reciprocal -> compare probabilities at ~1e-3 abs tolerance.
    assert jnp.allclose(out, ref, atol=2e-3, rtol=2e-3)
    assert jnp.allclose(jnp.sum(out, axis=-1), 1.0, atol=2e-3)

    # Larger batch: exercises the padded, multi-block parallel grid path.
    B2 = 300
    obs2 = make_obs(jax.random.fold_in(k_obs, 7), B2)
    out2 = jax.block_until_ready(policy_net_forward(obs2, params, block_b=128))
    ref2 = reference_forward(obs2, params)
    assert out2.shape == (B2, n_actions)
    assert jnp.allclose(out2, ref2, atol=2e-3, rtol=2e-3)
    assert jnp.allclose(jnp.sum(out2, axis=-1), 1.0, atol=2e-3)

    # Feature-major output path (skips the wrapper-side output transpose).
    out3 = jax.block_until_ready(
        policy_net_forward(obs2, params, block_b=256, feature_major_out=True))
    assert out3.shape == (n_actions, B2)
    assert jnp.allclose(out3.T, ref2, atol=2e-3, rtol=2e-3)

    print("KERNEL_OK")
</pallas_src>

<mosaic_0001>
module attributes {stable_mosaic.version = 11 : i64} {
  func.func @policy_kernel(%arg0: i32, %arg1: memref<2x128xi32, #tpu.memory_space<vmem>>, %arg2: memref<4x8xf32, #tpu.memory_space<vmem>>, %arg3: memref<4x128xf32, #tpu.memory_space<vmem>>) attributes {dimension_semantics = [#tpu.dimension_semantics<parallel>], iteration_bounds = array<i64: 1>, scalar_prefetch = 0 : i64, scratch_operands = 0 : i64, tpu.core_type = #tpu.core_type<tc>, window_params = [{transform_indices = @transform_0, window_bounds = array<i64: 2, 128>}, {pipeline_mode = #tpu.pipeline_mode<synchronous>, transform_indices = @transform_1, window_bounds = array<i64: 4, 8>}, {transform_indices = @transform_2, window_bounds = array<i64: 4, 128>}]} {
    %c0 = arith.constant 0 : index
    %c0_0 = arith.constant 0 : index
    %0 = vector.load %arg1[%c0, %c0_0] : memref<2x128xi32, #tpu.memory_space<vmem>>, vector<2x128xi32>
    %1 = vector.extract_strided_slice %0 {offsets = [0, 0], sizes = [1, 128], strides = [1, 1]} : vector<2x128xi32> to vector<1x128xi32>
    %c2_i32 = arith.constant 2 : i32
    %2 = vector.broadcast %c2_i32 : i32 to vector<1x128xi32>
    %3 = arith.muli %1, %2 : vector<1x128xi32>
    %4 = vector.extract_strided_slice %0 {offsets = [1, 0], sizes = [1, 128], strides = [1, 1]} : vector<2x128xi32> to vector<1x128xi32>
    %5 = arith.addi %3, %4 : vector<1x128xi32>
    %6 = tpu.iota {dimensions = array<i32: 0>} : vector<8x128xi32>
    %7 = vector.broadcast %5 : vector<1x128xi32> to vector<8x128xi32>
    %8 = arith.cmpi eq, %6, %7 : vector<8x128xi32>
    %9 = arith.extui %8 : vector<8x128xi1> to vector<8x128xi32>
    %10 = arith.sitofp %9 : vector<8x128xi32> to vector<8x128xf32>
    %c0_1 = arith.constant 0 : index
    %c0_2 = arith.constant 0 : index
    %11 = vector.load %arg2[%c0_1, %c0_2] : memref<4x8xf32, #tpu.memory_space<vmem>>, vector<4x8xf32>
    %cst = arith.constant dense<0.000000e+00> : vector<4x128xf32>
    %12 = tpu.matmul %11, %10, %cst {dimension_numbers = #tpu.dot_dimension_numbers<[1], [0], [0], [1], [0, 0, 1, 1], [], []>} : vector<4x8xf32>, vector<8x128xf32>, vector<4x128xf32> -> vector<4x128xf32>
    %cst_3 = arith.constant dense<0xFF800000> : vector<128xf32>
    %13 = vector.multi_reduction <maximumf>, %12, %cst_3 [0] : vector<4x128xf32> to vector<128xf32>
    %14 = vector.shape_cast %13 : vector<128xf32> to vector<1x128xf32>
    %15 = vector.broadcast %14 : vector<1x128xf32> to vector<4x128xf32>
    %16 = arith.subf %12, %15 : vector<4x128xf32>
    %17 = math.exp %16 : vector<4x128xf32>
    %cst_4 = arith.constant dense<0.000000e+00> : vector<128xf32>
    %18 = vector.multi_reduction <add>, %17, %cst_4 [0] : vector<4x128xf32> to vector<128xf32>
    %19 = vector.shape_cast %18 : vector<128xf32> to vector<1x128xf32>
    %20 = tpu.reciprocal %19 {approx = true} : vector<1x128xf32> -> vector<1x128xf32>
    %21 = vector.broadcast %20 : vector<1x128xf32> to vector<4x128xf32>
    %22 = arith.mulf %17, %21 : vector<4x128xf32>
    %c0_5 = arith.constant 0 : index
    %c0_6 = arith.constant 0 : index
    %23 = vector.load %arg3[%c0_5, %c0_6] : memref<4x128xf32, #tpu.memory_space<vmem>>, vector<4x128xf32>
    tpu.vector_store %arg3[%c0_5, %c0_6], %22 {strides = array<i32>} : memref<4x128xf32, #tpu.memory_space<vmem>>, vector<4x128xf32>,
    return
  }
  func.func @transform_0(%arg0: i32) -> (i32, i32) {
    %c0_i32 = arith.constant 0 : i32
    %c0_i32_0 = arith.constant 0 : i32
    return %c0_i32, %arg0 : i32, i32
  }
  func.func @transform_1(%arg0: i32) -> (i32, i32) {
    %c0_i32 = arith.constant 0 : i32
    %c0_i32_0 = arith.constant 0 : i32
    %c0_i32_1 = arith.constant 0 : i32
    return %c0_i32, %c0_i32_0 : i32, i32
  }
  func.func @transform_2(%arg0: i32) -> (i32, i32) {
    %c0_i32 = arith.constant 0 : i32
    %c0_i32_0 = arith.constant 0 : i32
    return %c0_i32, %arg0 : i32, i32
  }
}

</mosaic_0001>

<bundles_post_ra>
// kernel: tpu_custom_call.1
= control target key start
LH: loop header
LB: loop body
LE: loop exit
PB: predicated region body
PF: predicated region fallthrough
CT: control target
= control target key end

     0   :  { %7 = vsyncpa [#allocation3], 0  ;;  %s310_s0 = inlined_call_operand.hbm [shape: s32[2,128], index: 0, kind: input, shape index: {}]   ;;  %s311_s1 = inlined_call_operand.hbm [shape: f32[4,8], index: 1, kind: input, shape index: {}]   ;;  %s312_s2 = inlined_call_operand.hbm [shape: f32[4,128], index: 2, kind: output, shape index: {}]  }
   0x1   :  { %8 = vsyncpa [#allocation6], 0 }
   0x2   :  { %9 = vsyncpa [#allocation4], 0  ;;  %s253_s9 = smov [#allocation2]   ;;  %s254_s11 = smov [#allocation5]  }
   0x3   :  { %s16_s10 = sshll.u32 %s253_s9, 4  ;;  %s26_s12 = sshll.u32 %s254_s11, 4  ;;  %s17_s10 = int_to_ptr.vmem [resolvable:$true] %s16_s10  ;;  %s27_s12 = int_to_ptr.vmem [resolvable:$true] %s26_s12 }
   0x4   :  { %s181_s15 = scalar_lea.hbm %s310_s0, 32 }
   0x5   :  { %p182_p0 = scmp.ne.s32.totalorder %s310_s0, %s181_s15  ;;  %p185_p1 = scmp.lt.u32.totalorder %s181_s15, %s310_s0 }
   0x7   :  { %p187_p2 = pnand %p185_p1, %p182_p0 }
   0x9   :  { %190 = shalt.err (!%p187_p2)
}
   0xa   :  { %s191_s20 = scalar_lea.vmem %s17_s10, 32  ;;  %p196_p4 = scmp.lt.s32.totalorder %s17_s10, %s17_s10 }
   0xb   :  { %p192_p3 = scmp.ne.s32.totalorder %s17_s10, %s191_s20  ;;  %p197_p5 = scmp.lt.s32.totalorder %s191_s20, %s191_s20 }
   0xd   :  { %p198_p6 = por %p197_p5, %p196_p4 }
   0xf   :  { %p199_p7 = pnand %p198_p6, %p192_p3 }
  0x11   :  { %202 = shalt.err (!%p199_p7)
}
  0x12   :  { %19 = dma.hbm_to_vmem [thread:$0]  %s310_s0, 32, %s17_s10, [#allocation3]  }
  0x13   :  { %s203_s25 = scalar_lea.hbm %s311_s1, 64 }
  0x14   :  { %p204_p8 = scmp.ne.s32.totalorder %s311_s1, %s203_s25  ;;  %p207_p9 = scmp.lt.u32.totalorder %s203_s25, %s311_s1 }
  0x16   :  { %p209_p10 = pnand %p207_p9, %p204_p8 }
  0x18   :  { %212 = shalt.err (!%p209_p10)
}
  0x19   :  { %s213_s30 = scalar_lea.vmem %s27_s12, 64  ;;  %p218_p12 = scmp.lt.s32.totalorder %s27_s12, %s27_s12 }
  0x1a   :  { %p214_p11 = scmp.ne.s32.totalorder %s27_s12, %s213_s30  ;;  %p219_p13 = scmp.lt.s32.totalorder %s213_s30, %s213_s30 }
  0x1c   :  { %p220_p0 = por %p219_p13, %p218_p12 }
  0x1e   :  { %p221_p1 = pnand %p220_p0, %p214_p11 }
  0x20   :  { %224 = shalt.err (!%p221_p1)
}
  0x21   :  { %29 = dma.hbm_to_vmem [thread:$0]  %s311_s1, 64, %s27_s12, [#allocation6]  }
  0x22   :  { %247 = dma.done.wait [#allocation3], 32  }
  0x23   :  { %248 = vsyncadd [#allocation3], 4294967264 }
  0x24   :  { %249 = dma.done.wait [#allocation6], 64  }
  0x25   :  { %250 = vsyncadd [#allocation6], 4294967232  ;;  %v40_v0 = vlaneseq  ;;  %v255_v1 = vmov 0.0   ;;  %vm256_vm0 = vmmov 0   ;;  %v36_v3 = vld [vmem:[#allocation2] sm:$0x3] }
  0x26   :  { %166 = vmatprep.subr.mxu0 %v255_v1  ;;  %168 = vmatprep.mubr.msk.f32.mxu0 %vm256_vm0, %v255_v1  ;;  %v37_v4 = vmul.u32 2, %v36_v3  ;;  %v38_v5 = vrot.slane %v36_v3, 1  ;;  %v49_v9 = vld [vmem:[#allocation5] sm:$0xf]  ;;  %vm50_vm1 = vcmask 64512   ;;  %v257_v10 = vmov 1.0  }
  0x27   :  { %v41_v2 = vshrl.u32 %v40_v0, 7  ;;  %vm124_vm3 = vcmask 1043456   ;;  %s258_s1 = smov [#allocation7]  }
  0x28   :  { %v39_v7 = vadd.s32 %v38_v5, %v37_v4  ;;  %s151_s4 = sshll.u32 %s258_s1, 4  ;;  %s152_s4 = int_to_ptr.vmem [resolvable:$true] %s151_s4 }
  0x29   :  { %v44_v6 = vsub.s32 0, %v41_v2  ;;  %s225_s5 = scalar_lea.vmem %s152_s4, 64  ;;  %p230_p3 = scmp.lt.s32.totalorder %s152_s4, %s152_s4 }
  0x2a   :  { %p226_p2 = scmp.ne.s32.totalorder %s152_s4, %s225_s5  ;;  %p231_p4 = scmp.lt.s32.totalorder %s225_s5, %s225_s5 }
  0x2b   :  { %v45_v8 = vrot.slane %v39_v7, %v44_v6 }
  0x2c   :  { %p232_p5 = por %p231_p4, %p230_p3 }
  0x2d   :  { %vm46_vm2 = vcmp.eq.s32.totalorder %v41_v2, %v45_v8 }
  0x2e   :  { %167 = vmatpush3.msk.msra.mxu0 %vm46_vm2, %v257_v10  ;;  %p233_p6 = pnand %p232_p5, %p226_p2 }
  0x2f   :  { %169 = vmatmul.mubr.msk.f32.vlgmr.msra.gmra.mrb[0].mxu0 %vm50_vm1, %v49_v9 }
 0x102   :  { %v120_v11 = vpop.f32.mrb[0].mxu0 }
 0x103   :  { %v125_v12 = vsel %vm124_vm3, %v120_v11, -inf  ;;  %v170_v13 = vpop.f32.mrb[1].mxu0 }
 0x104   :  { %v126_v14 = vrot.slane %v125_v12, 4 }
 0x106   :  { %v127_v15 = vmax.f32 %v125_v12, %v126_v14 }
 0x108   :  { %v128_v16 = vrot.slane %v127_v15, 2 }
 0x10a   :  { %v129_v17 = vmax.f32 %v127_v15, %v128_v16 }
 0x10c   :  { %v130_v18 = vrot.slane %v129_v17, 1 }
 0x10e   :  { %v131_v19 = vmax.f32 %v129_v17, %v130_v18 }
 0x110   :  { %v132_v20 = vsub.f32 %v120_v11, %v131_v19 }
 0x112   :  { %v133_v21 = vmul.f32 1.442695, %v132_v20 }
 0x114   :  { %177 = vpow2.f32 %v133_v21 }
 0x11e   :  { %v178_v22 = vpop.eup %177 }
 0x11f   :  { %v135_v23 = vsel %vm124_vm3, %v178_v22, 0.0 }
 0x120   :  { %v136_v24 = vrot.slane %v135_v23, 4 }
 0x122   :  { %v137_v25 = vadd.f32 %v136_v24, %v135_v23 }
 0x124   :  { %v138_v26 = vrot.slane %v137_v25, 2 }
 0x126   :  { %v139_v27 = vadd.f32 %v138_v26, %v137_v25 }
 0x128   :  { %v140_v28 = vrot.slane %v139_v27, 1 }
 0x12a   :  { %v141_v29 = vadd.f32 %v140_v28, %v139_v27 }
 0x12c   :  { %179 = vrcp.f32 %v141_v29 }
 0x136   :  { %v180_v30 = vpop.eup %179 }
 0x137   :  { %v143_v31 = vmul.f32 %v180_v30, %v178_v22 }
 0x139   :  { %144 = vst [vmem:[#allocation7] sm:$0xf] %v143_v31 }
 0x13a   :  { %236 = shalt.err (!%p233_p6)
}
 0x13b   :  { %s237_s8 = scalar_lea.hbm %s312_s2, 64 }
 0x13c   :  { %p238_p7 = scmp.ne.s32.totalorder %s312_s2, %s237_s8  ;;  %p241_p8 = scmp.lt.u32.totalorder %s237_s8, %s312_s2 }
 0x13e   :  { %p243_p9 = pnand %p241_p8, %p238_p7 }
 0x140   :  { %246 = shalt.err (!%p243_p9)
}
 0x141   :  { %154 = dma.vmem_to_hbm [thread:$0]  %s152_s4, 64, %s312_s2, [#allocation4]  }
 0x142   :  { %251 = dma.done.wait [#allocation4], 64  }
 0x143   :  { %252 = vsyncadd [#allocation4], 4294967232 }
 0x144   :  { %158 = vsyncpa [#allocation3], 1 }
 0x145   :  { %159 = vsyncpa [#allocation6], 1 }
 0x146   :  { %160 = vsyncpa [#allocation4], 1 }

</bundles_post_ra>
